<compile_context>
chip_gen: v6e
topology: v6e:2x2x1
jax: 0.10.0
libtpu: 0.0.40
codegen_flags: <defaults>
</compile_context>

<pallas_src>
import jax
import jax.numpy as jnp
import numpy as np
from jax import lax
from jax.experimental import pallas as pl
from jax.experimental.pallas import tpu as pltpu

# ---------------- synthetic, deterministic "config" ----------------
B = 2      # batch of views
N = 128    # num_pixels per view
M = 256    # number of eikonal sample points

CFG = dict(
    color_weight=1.0,
    ray_mask_weight=0.1,
    depth_weight=0.1,
    normal_l1_weight=0.05,
    normal_cos_weight=0.05,
    eikonal_weight=0.1,
    smooth_weight=0.005,
    end_step=0,          # end_step <= 0  ->  decay = 1.0
)


def _monosdf_loss_kernel(pix_ref, grad_ref, o_ref, acc_ref):
    # pix_ref : (17, P)  rows: 0-2 rgb_pred, 3-5 rgb_gt, 6-8 normal_pred,
    #                          9-11 normal_gt, 12 vis mask, 13 ray_pred,
    #                          14 ray_gt, 15 depth_pred, 16 depth_gt
    # grad_ref: (6, M)   rows: 0-2 grad_theta, 3-5 grad_theta_nei
    # o_ref   : (8, 1)   [rgb, ray, depth, nl1, ncos, total, eik, smooth]
    # acc_ref : (8, Pmax) scratch: one sublane row per reduction term
    P = pix_ref.shape[1]
    M_ = grad_ref.shape[1]
    Pmax = acc_ref.shape[1]

    mask = pix_ref[12:13, :]                                        # (1, P)

    # ---- rgb L1 term (per-pixel channel sum, masked) ----
    rgb_t = jnp.sum(jnp.abs(pix_ref[0:3, :] - pix_ref[3:6, :]),
                    axis=0, keepdims=True) * mask

    # ---- ray mask squared-error term ----
    rd = pix_ref[13:14, :] - pix_ref[14:15, :]
    ray_t = rd * rd

    # ---- depth L1 term (gt clamped to max 10, masked) ----
    dep_t = jnp.abs(pix_ref[15:16, :] - jnp.minimum(pix_ref[16:17, :], 10.0)) * mask

    # ---- normal L1 + cosine terms; F.normalize(p=2, eps=1e-12) via rsqrt ----
    n_p = pix_ref[6:9, :]
    n_g = pix_ref[9:12, :]
    n_p = n_p * lax.rsqrt(jnp.maximum(jnp.sum(n_p * n_p, axis=0, keepdims=True), 1e-24))
    n_g = n_g * lax.rsqrt(jnp.maximum(jnp.sum(n_g * n_g, axis=0, keepdims=True), 1e-24))
    l1_t = jnp.sum(jnp.abs(n_p - n_g), axis=0, keepdims=True) * mask
    cos_t = (1.0 - jnp.sum(n_p * n_g, axis=0, keepdims=True)) * mask

    # ---- eikonal & smooth terms on SDF gradient samples ----
    g1 = grad_ref[0:3, :]
    g2 = grad_ref[3:6, :]
    gn1 = jnp.sqrt(jnp.sum(g1 * g1, axis=0, keepdims=True))          # (1, M)
    gn2 = jnp.sqrt(jnp.sum(g2 * g2, axis=0, keepdims=True))
    eik_t = (gn1 - 1.0) ** 2
    d12 = g1 / (gn1 + 1e-5) - g2 / (gn2 + 1e-5)
    smo_t = jnp.sqrt(jnp.sum(d12 * d12, axis=0, keepdims=True))

    # ---- pack every per-element term into its own sublane row, ONE lane-reduce ----
    if P != Pmax or M_ != Pmax:            # trace-time: only pad if lane counts differ
        acc_ref[...] = jnp.zeros_like(acc_ref)
    acc_ref[0:1, 0:P] = rgb_t
    acc_ref[1:2, 0:P] = ray_t
    acc_ref[2:3, 0:P] = dep_t
    acc_ref[3:4, 0:P] = l1_t
    acc_ref[4:5, 0:P] = cos_t
    acc_ref[5:6, 0:P] = mask
    acc_ref[6:7, 0:M_] = eik_t
    acc_ref[7:8, 0:M_] = smo_t

    ps = jnp.sum(acc_ref[...], axis=-1, keepdims=True)               # (8, 1)
    # ps rows: [rgb_sum, ray_ss, depth_sum, l1_sum, cos_sum, mask_sum, eik_sum, smo_sum]

    inv_m = 1.0 / ps[5:6, :]                                         # (1,1) 1/mask_sum
    decay = 1.0                                                      # end_step <= 0

    # Per-row selector / constant-scale / weight vectors are built from an iota
    # (not jnp.array literals, which would be captured array constants).
    row = lax.broadcasted_iota(jnp.int32, (8, 1), 0)
    is_masked = (row == 0) | (row == 2) | (row == 3) | (row == 4)
    sel = jnp.where(is_masked, 1.0, 0.0).astype(jnp.float32)
    cvec = (jnp.where(row == 1, 1.0 / P, 0.0)
            + jnp.where(row >= 6, 1.0 / M_, 0.0)).astype(jnp.float32)

    losses = ps * (inv_m * sel + cvec)
    # losses rows: [rgb, ray, depth, nl1, ncos, 0, eik, smooth]

    w = (jnp.where(row == 0, CFG['color_weight'], 0.0)
         + jnp.where(row == 1, CFG['ray_mask_weight'], 0.0)
         + jnp.where(row == 2, decay * CFG['depth_weight'], 0.0)
         + jnp.where(row == 3, decay * CFG['normal_l1_weight'], 0.0)
         + jnp.where(row == 4, decay * CFG['normal_cos_weight'], 0.0)
         + jnp.where(row == 6, CFG['eikonal_weight'], 0.0)
         + jnp.where(row == 7, CFG['smooth_weight'], 0.0)).astype(jnp.float32)

    total = jnp.sum(losses * w, axis=0, keepdims=True)               # (1, 1)
    e5 = jnp.where(row == 5, 1.0, 0.0).astype(jnp.float32)
    o_ref[...] = losses + total * e5                                 # single vector store


def monosdf_loss(model_outputs, ground_truth):
    f32 = jnp.float32

    def col(x, c):
        return x.reshape(-1, c).astype(f32)

    # one concatenate + one transpose -> a single channel-major pixel slab (17, P)
    pix = jnp.concatenate([
        col(model_outputs['rgb_values'], 3),
        col(ground_truth['rgb'], 3),
        col(model_outputs['normal_map'], 3),
        col(ground_truth['normal'], 3),
        col(ground_truth['vis_pixel'], 1),
        col(model_outputs['ray_mask'], 1),
        col(ground_truth['full_mask_pixel'], 1),
        col(model_outputs['depth_values'], 1),
        col(ground_truth['depth'], 1),
    ], axis=1).T

    # gradient slab (6, M)
    grad = jnp.concatenate([model_outputs['grad_theta'],
                            model_outputs['grad_theta_nei']], axis=1).T.astype(f32)

    P = pix.shape[1]
    Mm = grad.shape[1]
    Pmax = max(P, Mm)

    vmem = pl.BlockSpec(memory_space=pltpu.MemorySpace.VMEM)
    cost = pl.CostEstimate(
        flops=64 * P + 48 * Mm,
        transcendentals=2 * P + 3 * Mm,
        bytes_accessed=4 * (pix.size + grad.size + 8),
    )

    out = pl.pallas_call(
        _monosdf_loss_kernel,
        out_shape=jax.ShapeDtypeStruct((8, 1), f32),
        in_specs=[vmem, vmem],
        out_specs=vmem,
        scratch_shapes=[pltpu.VMEM((8, Pmax), f32)],
        cost_estimate=cost,
    )(pix, grad)

    out = out[:, 0]
    keys = ['rgb_loss', 'ray_mask_loss', 'depth_loss', 'normal_l1',
            'normal_cos', 'total_loss', 'eikonal_loss', 'smooth_loss']
    return {k: out[i] for i, k in enumerate(keys)}


def monosdf_loss_ref(model_outputs, ground_truth):
    """Pure-JAX re-statement of the PyTorch forward (for verification)."""
    f32 = jnp.float32
    rgb_pred = model_outputs['rgb_values'].reshape(-1, N, 3).astype(f32)
    rgb_gt = ground_truth['rgb'].astype(f32)
    vis = ground_truth['vis_pixel'].reshape(-1, N, 1).astype(f32)

    rgb_l = jnp.sum(jnp.abs(rgb_pred - rgb_gt) * vis) / jnp.sum(vis)

    ray_pred = model_outputs['ray_mask'].reshape(-1, N).astype(f32)
    ray_gt = ground_truth['full_mask_pixel'].astype(f32)
    ray_l = jnp.mean((ray_pred - ray_gt) ** 2)

    depth_pred = model_outputs['depth_values'].reshape(-1, N, 1).astype(f32)
    depth_gt = jnp.minimum(ground_truth['depth'].astype(f32), 10.0)
    depth_l = jnp.sum(jnp.abs(depth_pred - depth_gt) * vis) / jnp.sum(vis)

    def l2norm(x):
        return x / jnp.maximum(jnp.linalg.norm(x, axis=-1, keepdims=True), 1e-12)
    npred = l2norm(model_outputs['normal_map'].reshape(-1, N, 3).astype(f32))
    ngt = l2norm(ground_truth['normal'].astype(f32))
    m2 = vis.reshape(-1, N)
    nl1 = jnp.sum(jnp.sum(jnp.abs(npred - ngt), -1) * m2) / jnp.sum(m2)
    ncos = jnp.sum((1.0 - jnp.sum(npred * ngt, -1)) * m2) / jnp.sum(m2)

    g1 = model_outputs['grad_theta'].astype(f32)
    g2 = model_outputs['grad_theta_nei'].astype(f32)
    eik = jnp.mean((jnp.linalg.norm(g1, axis=1) - 1.0) ** 2)
    n1 = g1 / (jnp.linalg.norm(g1, axis=1)[:, None] + 1e-5)
    n2 = g2 / (jnp.linalg.norm(g2, axis=1)[:, None] + 1e-5)
    smooth = jnp.mean(jnp.linalg.norm(n1 - n2, axis=-1))

    total = (CFG['color_weight'] * rgb_l + CFG['ray_mask_weight'] * ray_l
             + CFG['depth_weight'] * depth_l
             + CFG['normal_l1_weight'] * nl1 + CFG['normal_cos_weight'] * ncos
             + CFG['eikonal_weight'] * eik + CFG['smooth_weight'] * smooth)
    return dict(rgb_loss=rgb_l, ray_mask_loss=ray_l, depth_loss=depth_l,
                normal_l1=nl1, normal_cos=ncos, eikonal_loss=eik,
                smooth_loss=smooth, total_loss=total)


if __name__ == "__main__":
    key = jax.random.PRNGKey(0)
    ks = jax.random.split(key, 12)

    model_outputs = {
        'rgb_values':     jax.random.uniform(ks[0], (B * N, 3), jnp.float32),
        'ray_mask':       jax.random.uniform(ks[1], (B * N,), jnp.float32),
        'depth_values':   jax.random.uniform(ks[2], (B * N, 1), jnp.float32) * 12.0,
        'normal_map':     jax.random.normal(ks[3], (B * N, 3), jnp.float32),
        'grad_theta':     jax.random.normal(ks[4], (M, 3), jnp.float32),
        'grad_theta_nei': jax.random.normal(ks[5], (M, 3), jnp.float32),
    }
    ground_truth = {
        'rgb':             jax.random.uniform(ks[6], (B, N, 3), jnp.float32),
        'vis_pixel':       jax.random.bernoulli(ks[7], 0.7, (B, N)),
        'full_mask_pixel': jax.random.bernoulli(ks[8], 0.5, (B, N)).astype(jnp.float32),
        'depth':           jax.random.uniform(ks[9], (B, N, 1), jnp.float32) * 15.0,
        'normal':          jax.random.normal(ks[10], (B, N, 3), jnp.float32),
    }

    out = monosdf_loss(model_outputs, ground_truth)
    out = {k: jax.block_until_ready(v) for k, v in out.items()}

    ref = monosdf_loss_ref(model_outputs, ground_truth)
    for k in out:
        np.testing.assert_allclose(np.asarray(out[k]), np.asarray(ref[k]),
                                   rtol=2e-5, atol=1e-6)

    print("KERNEL_OK")
</pallas_src>

<mosaic_0001>
module attributes {stable_mosaic.version = 11 : i64} {
  func.func @_monosdf_loss_kernel(%arg0: memref<17x256xf32, #tpu.memory_space<vmem>>, %arg1: memref<6x256xf32, #tpu.memory_space<vmem>>, %arg2: memref<8x1xf32, #tpu.memory_space<vmem>>, %arg3: memref<8x256xf32, #tpu.memory_space<vmem>>) attributes {dimension_semantics = [], scalar_prefetch = 0 : i64, scratch_operands = 1 : i64, tpu.core_type = #tpu.core_type<tc>} {
    %c12 = arith.constant 12 : index
    %c0 = arith.constant 0 : index
    %0 = vector.load %arg0[%c12, %c0] : memref<17x256xf32, #tpu.memory_space<vmem>>, vector<1x256xf32>
    %c0_0 = arith.constant 0 : index
    %c0_1 = arith.constant 0 : index
    %1 = vector.load %arg0[%c0_0, %c0_1] : memref<17x256xf32, #tpu.memory_space<vmem>>, vector<3x256xf32>
    %c3 = arith.constant 3 : index
    %c0_2 = arith.constant 0 : index
    %2 = vector.load %arg0[%c3, %c0_2] : memref<17x256xf32, #tpu.memory_space<vmem>>, vector<3x256xf32>
    %3 = arith.subf %1, %2 : vector<3x256xf32>
    %4 = math.absf %3 : vector<3x256xf32>
    %cst = arith.constant dense<0.000000e+00> : vector<256xf32>
    %5 = vector.multi_reduction <add>, %4, %cst [0] : vector<3x256xf32> to vector<256xf32>
    %6 = vector.shape_cast %5 : vector<256xf32> to vector<1x256xf32>
    %7 = arith.mulf %6, %0 : vector<1x256xf32>
    %c13 = arith.constant 13 : index
    %c0_3 = arith.constant 0 : index
    %8 = vector.load %arg0[%c13, %c0_3] : memref<17x256xf32, #tpu.memory_space<vmem>>, vector<1x256xf32>
    %c14 = arith.constant 14 : index
    %c0_4 = arith.constant 0 : index
    %9 = vector.load %arg0[%c14, %c0_4] : memref<17x256xf32, #tpu.memory_space<vmem>>, vector<1x256xf32>
    %10 = arith.subf %8, %9 : vector<1x256xf32>
    %11 = arith.mulf %10, %10 : vector<1x256xf32>
    %c15 = arith.constant 15 : index
    %c0_5 = arith.constant 0 : index
    %12 = vector.load %arg0[%c15, %c0_5] : memref<17x256xf32, #tpu.memory_space<vmem>>, vector<1x256xf32>
    %c16 = arith.constant 16 : index
    %c0_6 = arith.constant 0 : index
    %13 = vector.load %arg0[%c16, %c0_6] : memref<17x256xf32, #tpu.memory_space<vmem>>, vector<1x256xf32>
    %cst_7 = arith.constant 1.000000e+01 : f32
    %14 = vector.broadcast %cst_7 : f32 to vector<1x256xf32>
    %15 = arith.minimumf %13, %14 : vector<1x256xf32>
    %16 = arith.subf %12, %15 : vector<1x256xf32>
    %17 = math.absf %16 : vector<1x256xf32>
    %18 = arith.mulf %17, %0 : vector<1x256xf32>
    %c6 = arith.constant 6 : index
    %c0_8 = arith.constant 0 : index
    %19 = vector.load %arg0[%c6, %c0_8] : memref<17x256xf32, #tpu.memory_space<vmem>>, vector<3x256xf32>
    %c9 = arith.constant 9 : index
    %c0_9 = arith.constant 0 : index
    %20 = vector.load %arg0[%c9, %c0_9] : memref<17x256xf32, #tpu.memory_space<vmem>>, vector<3x256xf32>
    %21 = arith.mulf %19, %19 : vector<3x256xf32>
    %cst_10 = arith.constant dense<0.000000e+00> : vector<256xf32>
    %22 = vector.multi_reduction <add>, %21, %cst_10 [0] : vector<3x256xf32> to vector<256xf32>
    %23 = vector.shape_cast %22 : vector<256xf32> to vector<1x256xf32>
    %cst_11 = arith.constant 1.000000e-24 : f32
    %24 = vector.broadcast %cst_11 : f32 to vector<1x256xf32>
    %25 = arith.maximumf %23, %24 : vector<1x256xf32>
    %26 = math.rsqrt %25 : vector<1x256xf32>
    %27 = vector.broadcast %26 : vector<1x256xf32> to vector<3x256xf32>
    %28 = arith.mulf %19, %27 : vector<3x256xf32>
    %29 = arith.mulf %20, %20 : vector<3x256xf32>
    %cst_12 = arith.constant dense<0.000000e+00> : vector<256xf32>
    %30 = vector.multi_reduction <add>, %29, %cst_12 [0] : vector<3x256xf32> to vector<256xf32>
    %31 = vector.shape_cast %30 : vector<256xf32> to vector<1x256xf32>
    %cst_13 = arith.constant 1.000000e-24 : f32
    %32 = vector.broadcast %cst_13 : f32 to vector<1x256xf32>
    %33 = arith.maximumf %31, %32 : vector<1x256xf32>
    %34 = math.rsqrt %33 : vector<1x256xf32>
    %35 = vector.broadcast %34 : vector<1x256xf32> to vector<3x256xf32>
    %36 = arith.mulf %20, %35 : vector<3x256xf32>
    %37 = arith.subf %28, %36 : vector<3x256xf32>
    %38 = math.absf %37 : vector<3x256xf32>
    %cst_14 = arith.constant dense<0.000000e+00> : vector<256xf32>
    %39 = vector.multi_reduction <add>, %38, %cst_14 [0] : vector<3x256xf32> to vector<256xf32>
    %40 = vector.shape_cast %39 : vector<256xf32> to vector<1x256xf32>
    %41 = arith.mulf %40, %0 : vector<1x256xf32>
    %42 = arith.mulf %28, %36 : vector<3x256xf32>
    %cst_15 = arith.constant dense<0.000000e+00> : vector<256xf32>
    %43 = vector.multi_reduction <add>, %42, %cst_15 [0] : vector<3x256xf32> to vector<256xf32>
    %44 = vector.shape_cast %43 : vector<256xf32> to vector<1x256xf32>
    %cst_16 = arith.constant 1.000000e+00 : f32
    %45 = vector.broadcast %cst_16 : f32 to vector<1x256xf32>
    %46 = arith.subf %45, %44 : vector<1x256xf32>
    %47 = arith.mulf %46, %0 : vector<1x256xf32>
    %c0_17 = arith.constant 0 : index
    %c0_18 = arith.constant 0 : index
    %48 = vector.load %arg1[%c0_17, %c0_18] : memref<6x256xf32, #tpu.memory_space<vmem>>, vector<3x256xf32>
    %c3_19 = arith.constant 3 : index
    %c0_20 = arith.constant 0 : index
    %49 = vector.load %arg1[%c3_19, %c0_20] : memref<6x256xf32, #tpu.memory_space<vmem>>, vector<3x256xf32>
    %50 = arith.mulf %48, %48 : vector<3x256xf32>
    %cst_21 = arith.constant dense<0.000000e+00> : vector<256xf32>
    %51 = vector.multi_reduction <add>, %50, %cst_21 [0] : vector<3x256xf32> to vector<256xf32>
    %52 = vector.shape_cast %51 : vector<256xf32> to vector<1x256xf32>
    %53 = math.sqrt %52 : vector<1x256xf32>
    %54 = arith.mulf %49, %49 : vector<3x256xf32>
    %cst_22 = arith.constant dense<0.000000e+00> : vector<256xf32>
    %55 = vector.multi_reduction <add>, %54, %cst_22 [0] : vector<3x256xf32> to vector<256xf32>
    %56 = vector.shape_cast %55 : vector<256xf32> to vector<1x256xf32>
    %57 = math.sqrt %56 : vector<1x256xf32>
    %cst_23 = arith.constant 1.000000e+00 : f32
    %58 = vector.broadcast %cst_23 : f32 to vector<1x256xf32>
    %59 = arith.subf %53, %58 : vector<1x256xf32>
    %60 = arith.mulf %59, %59 : vector<1x256xf32>
    %cst_24 = arith.constant 9.99999974E-6 : f32
    %61 = vector.broadcast %cst_24 : f32 to vector<1x256xf32>
    %62 = arith.addf %53, %61 : vector<1x256xf32>
    %63 = vector.broadcast %62 : vector<1x256xf32> to vector<3x256xf32>
    %64 = arith.divf %48, %63 : vector<3x256xf32>
    %cst_25 = arith.constant 9.99999974E-6 : f32
    %65 = vector.broadcast %cst_25 : f32 to vector<1x256xf32>
    %66 = arith.addf %57, %65 : vector<1x256xf32>
    %67 = vector.broadcast %66 : vector<1x256xf32> to vector<3x256xf32>
    %68 = arith.divf %49, %67 : vector<3x256xf32>
    %69 = arith.subf %64, %68 : vector<3x256xf32>
    %70 = arith.mulf %69, %69 : vector<3x256xf32>
    %cst_26 = arith.constant dense<0.000000e+00> : vector<256xf32>
    %71 = vector.multi_reduction <add>, %70, %cst_26 [0] : vector<3x256xf32> to vector<256xf32>
    %72 = vector.shape_cast %71 : vector<256xf32> to vector<1x256xf32>
    %73 = math.sqrt %72 : vector<1x256xf32>
    %c0_27 = arith.constant 0 : index
    %c0_28 = arith.constant 0 : index
    %74 = vector.load %arg3[%c0_27, %c0_28] : memref<8x256xf32, #tpu.memory_space<vmem>>, vector<1x256xf32>
    tpu.vector_store %arg3[%c0_27, %c0_28], %7 {strides = array<i32>} : memref<8x256xf32, #tpu.memory_space<vmem>>, vector<1x256xf32>,
    %c1 = arith.constant 1 : index
    %c0_29 = arith.constant 0 : index
    %75 = vector.load %arg3[%c1, %c0_29] : memref<8x256xf32, #tpu.memory_space<vmem>>, vector<1x256xf32>
    tpu.vector_store %arg3[%c1, %c0_29], %11 {strides = array<i32>} : memref<8x256xf32, #tpu.memory_space<vmem>>, vector<1x256xf32>,
    %c2 = arith.constant 2 : index
    %c0_30 = arith.constant 0 : index
    %76 = vector.load %arg3[%c2, %c0_30] : memref<8x256xf32, #tpu.memory_space<vmem>>, vector<1x256xf32>
    tpu.vector_store %arg3[%c2, %c0_30], %18 {strides = array<i32>} : memref<8x256xf32, #tpu.memory_space<vmem>>, vector<1x256xf32>,
    %c3_31 = arith.constant 3 : index
    %c0_32 = arith.constant 0 : index
    %77 = vector.load %arg3[%c3_31, %c0_32] : memref<8x256xf32, #tpu.memory_space<vmem>>, vector<1x256xf32>
    tpu.vector_store %arg3[%c3_31, %c0_32], %41 {strides = array<i32>} : memref<8x256xf32, #tpu.memory_space<vmem>>, vector<1x256xf32>,
    %c4 = arith.constant 4 : index
    %c0_33 = arith.constant 0 : index
    %78 = vector.load %arg3[%c4, %c0_33] : memref<8x256xf32, #tpu.memory_space<vmem>>, vector<1x256xf32>
    tpu.vector_store %arg3[%c4, %c0_33], %47 {strides = array<i32>} : memref<8x256xf32, #tpu.memory_space<vmem>>, vector<1x256xf32>,
    %c5 = arith.constant 5 : index
    %c0_34 = arith.constant 0 : index
    %79 = vector.load %arg3[%c5, %c0_34] : memref<8x256xf32, #tpu.memory_space<vmem>>, vector<1x256xf32>
    tpu.vector_store %arg3[%c5, %c0_34], %0 {strides = array<i32>} : memref<8x256xf32, #tpu.memory_space<vmem>>, vector<1x256xf32>,
    %c6_35 = arith.constant 6 : index
    %c0_36 = arith.constant 0 : index
    %80 = vector.load %arg3[%c6_35, %c0_36] : memref<8x256xf32, #tpu.memory_space<vmem>>, vector<1x256xf32>
    tpu.vector_store %arg3[%c6_35, %c0_36], %60 {strides = array<i32>} : memref<8x256xf32, #tpu.memory_space<vmem>>, vector<1x256xf32>,
    %c7 = arith.constant 7 : index
    %c0_37 = arith.constant 0 : index
    %81 = vector.load %arg3[%c7, %c0_37] : memref<8x256xf32, #tpu.memory_space<vmem>>, vector<1x256xf32>
    tpu.vector_store %arg3[%c7, %c0_37], %73 {strides = array<i32>} : memref<8x256xf32, #tpu.memory_space<vmem>>, vector<1x256xf32>,
    %c0_38 = arith.constant 0 : index
    %c0_39 = arith.constant 0 : index
    %82 = vector.load %arg3[%c0_38, %c0_39] : memref<8x256xf32, #tpu.memory_space<vmem>>, vector<8x256xf32>
    %cst_40 = arith.constant dense<0.000000e+00> : vector<8xf32>
    %83 = vector.multi_reduction <add>, %82, %cst_40 [1] : vector<8x256xf32> to vector<8xf32>
    %84 = vector.shape_cast %83 : vector<8xf32> to vector<8x1xf32>
    %85 = vector.extract_strided_slice %84 {offsets = [5, 0], sizes = [1, 1], strides = [1, 1]} : vector<8x1xf32> to vector<1x1xf32>
    %cst_41 = arith.constant 1.000000e+00 : f32
    %86 = vector.broadcast %cst_41 : f32 to vector<1x1xf32>
    %87 = arith.divf %86, %85 : vector<1x1xf32>
    %88 = tpu.iota {dimensions = array<i32: 0>} : vector<8x1xi32>
    %c0_i32 = arith.constant 0 : i32
    %89 = vector.broadcast %c0_i32 : i32 to vector<8x1xi32>
    %90 = arith.cmpi eq, %88, %89 : vector<8x1xi32>
    %c2_i32 = arith.constant 2 : i32
    %91 = vector.broadcast %c2_i32 : i32 to vector<8x1xi32>
    %92 = arith.cmpi eq, %88, %91 : vector<8x1xi32>
    %93 = arith.ori %90, %92 : vector<8x1xi1>
    %c3_i32 = arith.constant 3 : i32
    %94 = vector.broadcast %c3_i32 : i32 to vector<8x1xi32>
    %95 = arith.cmpi eq, %88, %94 : vector<8x1xi32>
    %96 = arith.ori %93, %95 : vector<8x1xi1>
    %c4_i32 = arith.constant 4 : i32
    %97 = vector.broadcast %c4_i32 : i32 to vector<8x1xi32>
    %98 = arith.cmpi eq, %88, %97 : vector<8x1xi32>
    %99 = arith.ori %96, %98 : vector<8x1xi1>
    %cst_42 = arith.constant 1.000000e+00 : f32
    %cst_43 = arith.constant 0.000000e+00 : f32
    %100 = vector.broadcast %cst_42 : f32 to vector<8x1xf32>
    %101 = vector.broadcast %cst_43 : f32 to vector<8x1xf32>
    %102 = arith.select %99, %100, %101 : vector<8x1xi1>, vector<8x1xf32>
    %c1_i32 = arith.constant 1 : i32
    %103 = vector.broadcast %c1_i32 : i32 to vector<8x1xi32>
    %104 = arith.cmpi eq, %88, %103 : vector<8x1xi32>
    %cst_44 = arith.constant 3.906250e-03 : f32
    %cst_45 = arith.constant 0.000000e+00 : f32
    %105 = vector.broadcast %cst_44 : f32 to vector<8x1xf32>
    %106 = vector.broadcast %cst_45 : f32 to vector<8x1xf32>
    %107 = arith.select %104, %105, %106 : vector<8x1xi1>, vector<8x1xf32>
    %c6_i32 = arith.constant 6 : i32
    %108 = vector.broadcast %c6_i32 : i32 to vector<8x1xi32>
    %109 = arith.cmpi sge, %88, %108 : vector<8x1xi32>
    %cst_46 = arith.constant 3.906250e-03 : f32
    %cst_47 = arith.constant 0.000000e+00 : f32
    %110 = vector.broadcast %cst_46 : f32 to vector<8x1xf32>
    %111 = vector.broadcast %cst_47 : f32 to vector<8x1xf32>
    %112 = arith.select %109, %110, %111 : vector<8x1xi1>, vector<8x1xf32>
    %113 = arith.addf %107, %112 : vector<8x1xf32>
    %114 = vector.broadcast %87 : vector<1x1xf32> to vector<8x1xf32>
    %115 = arith.mulf %114, %102 : vector<8x1xf32>
    %116 = arith.addf %115, %113 : vector<8x1xf32>
    %117 = arith.mulf %84, %116 : vector<8x1xf32>
    %c0_i32_48 = arith.constant 0 : i32
    %118 = vector.broadcast %c0_i32_48 : i32 to vector<8x1xi32>
    %119 = arith.cmpi eq, %88, %118 : vector<8x1xi32>
    %cst_49 = arith.constant 1.000000e+00 : f32
    %cst_50 = arith.constant 0.000000e+00 : f32
    %120 = vector.broadcast %cst_49 : f32 to vector<8x1xf32>
    %121 = vector.broadcast %cst_50 : f32 to vector<8x1xf32>
    %122 = arith.select %119, %120, %121 : vector<8x1xi1>, vector<8x1xf32>
    %c1_i32_51 = arith.constant 1 : i32
    %123 = vector.broadcast %c1_i32_51 : i32 to vector<8x1xi32>
    %124 = arith.cmpi eq, %88, %123 : vector<8x1xi32>
    %cst_52 = arith.constant 1.000000e-01 : f32
    %cst_53 = arith.constant 0.000000e+00 : f32
    %125 = vector.broadcast %cst_52 : f32 to vector<8x1xf32>
    %126 = vector.broadcast %cst_53 : f32 to vector<8x1xf32>
    %127 = arith.select %124, %125, %126 : vector<8x1xi1>, vector<8x1xf32>
    %128 = arith.addf %122, %127 : vector<8x1xf32>
    %c2_i32_54 = arith.constant 2 : i32
    %129 = vector.broadcast %c2_i32_54 : i32 to vector<8x1xi32>
    %130 = arith.cmpi eq, %88, %129 : vector<8x1xi32>
    %cst_55 = arith.constant 1.000000e-01 : f32
    %cst_56 = arith.constant 0.000000e+00 : f32
    %131 = vector.broadcast %cst_55 : f32 to vector<8x1xf32>
    %132 = vector.broadcast %cst_56 : f32 to vector<8x1xf32>
    %133 = arith.select %130, %131, %132 : vector<8x1xi1>, vector<8x1xf32>
    %134 = arith.addf %128, %133 : vector<8x1xf32>
    %c3_i32_57 = arith.constant 3 : i32
    %135 = vector.broadcast %c3_i32_57 : i32 to vector<8x1xi32>
    %136 = arith.cmpi eq, %88, %135 : vector<8x1xi32>
    %cst_58 = arith.constant 5.000000e-02 : f32
    %cst_59 = arith.constant 0.000000e+00 : f32
    %137 = vector.broadcast %cst_58 : f32 to vector<8x1xf32>
    %138 = vector.broadcast %cst_59 : f32 to vector<8x1xf32>
    %139 = arith.select %136, %137, %138 : vector<8x1xi1>, vector<8x1xf32>
    %140 = arith.addf %134, %139 : vector<8x1xf32>
    %c4_i32_60 = arith.constant 4 : i32
    %141 = vector.broadcast %c4_i32_60 : i32 to vector<8x1xi32>
    %142 = arith.cmpi eq, %88, %141 : vector<8x1xi32>
    %cst_61 = arith.constant 5.000000e-02 : f32
    %cst_62 = arith.constant 0.000000e+00 : f32
    %143 = vector.broadcast %cst_61 : f32 to vector<8x1xf32>
    %144 = vector.broadcast %cst_62 : f32 to vector<8x1xf32>
    %145 = arith.select %142, %143, %144 : vector<8x1xi1>, vector<8x1xf32>
    %146 = arith.addf %140, %145 : vector<8x1xf32>
    %c6_i32_63 = arith.constant 6 : i32
    %147 = vector.broadcast %c6_i32_63 : i32 to vector<8x1xi32>
    %148 = arith.cmpi eq, %88, %147 : vector<8x1xi32>
    %cst_64 = arith.constant 1.000000e-01 : f32
    %cst_65 = arith.constant 0.000000e+00 : f32
    %149 = vector.broadcast %cst_64 : f32 to vector<8x1xf32>
    %150 = vector.broadcast %cst_65 : f32 to vector<8x1xf32>
    %151 = arith.select %148, %149, %150 : vector<8x1xi1>, vector<8x1xf32>
    %152 = arith.addf %146, %151 : vector<8x1xf32>
    %c7_i32 = arith.constant 7 : i32
    %153 = vector.broadcast %c7_i32 : i32 to vector<8x1xi32>
    %154 = arith.cmpi eq, %88, %153 : vector<8x1xi32>
    %cst_66 = arith.constant 5.000000e-03 : f32
    %cst_67 = arith.constant 0.000000e+00 : f32
    %155 = vector.broadcast %cst_66 : f32 to vector<8x1xf32>
    %156 = vector.broadcast %cst_67 : f32 to vector<8x1xf32>
    %157 = arith.select %154, %155, %156 : vector<8x1xi1>, vector<8x1xf32>
    %158 = arith.addf %152, %157 : vector<8x1xf32>
    %159 = arith.mulf %117, %158 : vector<8x1xf32>
    %cst_68 = arith.constant dense<0.000000e+00> : vector<1xf32>
    %160 = vector.multi_reduction <add>, %159, %cst_68 [0] : vector<8x1xf32> to vector<1xf32>
    %161 = vector.shape_cast %160 : vector<1xf32> to vector<1x1xf32>
    %c5_i32 = arith.constant 5 : i32
    %162 = vector.broadcast %c5_i32 : i32 to vector<8x1xi32>
    %163 = arith.cmpi eq, %88, %162 : vector<8x1xi32>
    %cst_69 = arith.constant 1.000000e+00 : f32
    %cst_70 = arith.constant 0.000000e+00 : f32
    %164 = vector.broadcast %cst_69 : f32 to vector<8x1xf32>
    %165 = vector.broadcast %cst_70 : f32 to vector<8x1xf32>
    %166 = arith.select %163, %164, %165 : vector<8x1xi1>, vector<8x1xf32>
    %167 = vector.broadcast %161 : vector<1x1xf32> to vector<8x1xf32>
    %168 = arith.mulf %167, %166 : vector<8x1xf32>
    %169 = arith.addf %117, %168 : vector<8x1xf32>
    %c0_71 = arith.constant 0 : index
    %c0_72 = arith.constant 0 : index
    %170 = vector.load %arg2[%c0_71, %c0_72] : memref<8x1xf32, #tpu.memory_space<vmem>>, vector<8x1xf32>
    tpu.vector_store %arg2[%c0_71, %c0_72], %169 {strides = array<i32>} : memref<8x1xf32, #tpu.memory_space<vmem>>, vector<8x1xf32>,
    return
  }
}

</mosaic_0001>

<bundles_post_ra>
// kernel: tpu_custom_call.1
= control target key start
LH: loop header
LB: loop body
LE: loop exit
PB: predicated region body
PF: predicated region fallthrough
CT: control target
= control target key end

     0   :  { %7 = vsyncpa [#allocation4], 0  ;;  %s841_s0 = inlined_call_operand.hbm [shape: f32[17,256], index: 0, kind: input, shape index: {}]   ;;  %s842_s1 = inlined_call_operand.hbm [shape: f32[6,256], index: 1, kind: input, shape index: {}]   ;;  %s843_s2 = inlined_call_operand.vmem [shape: f32[8,1], index: 2, kind: output, shape index: {}]  }
   0x1   :  { %8 = vsyncpa [#allocation6], 0  ;;  %s630_s9 = smov [#allocation3]  }
   0x2   :  { %s14_s10 = sshll.u32 %s630_s9, 4  ;;  %s15_s10 = int_to_ptr.vmem [resolvable:$true] %s14_s10 }
   0x3   :  { %s594_s11 = scalar_lea.vmem %s15_s10, 768  ;;  %p599_p1 = scmp.lt.s32.totalorder %s15_s10, %s15_s10 }
   0x4   :  { %p595_p0 = scmp.ne.s32.totalorder %s15_s10, %s594_s11  ;;  %p600_p2 = scmp.lt.s32.totalorder %s594_s11, %s594_s11 }
   0x6   :  { %p601_p3 = por %p600_p2, %p599_p1 }
   0x8   :  { %p602_p4 = pnand %p601_p3, %p595_p0 }
   0xa   :  { %605 = shalt.err (!%p602_p4)
}
   0xb   :  { %s631_s12 = smov 256   ;;  %s632_s13 = smov 16  }
   0xc   :  { %20 = dma.hbm_to_vmem [thread:$0]  %s841_s0, 768, %s15_s10, [#allocation4], %s631_s12, %s631_s12, %s632_s13  }
   0xd   :  { %s633_s16 = smov [#allocation5]  }
   0xe   :  { %s27_s17 = sshll.u32 %s633_s16, 4  ;;  %s28_s17 = int_to_ptr.vmem [resolvable:$true] %s27_s17 }
   0xf   :  { %s614_s18 = scalar_lea.vmem %s28_s17, 256  ;;  %p619_p6 = scmp.lt.s32.totalorder %s28_s17, %s28_s17 }
  0x10   :  { %p615_p5 = scmp.ne.s32.totalorder %s28_s17, %s614_s18  ;;  %p620_p7 = scmp.lt.s32.totalorder %s614_s18, %s614_s18 }
  0x12   :  { %p621_p8 = por %p620_p7, %p619_p6 }
  0x14   :  { %p622_p9 = pnand %p621_p8, %p615_p5 }
  0x16   :  { %625 = shalt.err (!%p622_p9)
}
  0x17   :  { %30 = dma.hbm_to_vmem [thread:$0]  %s842_s1, 256, %s28_s17, [#allocation6]  }
  0x18   :  { %626 = dma.done.wait [#allocation4], 768  }
  0x19   :  { %627 = vsyncadd [#allocation4], 4294966528 }
  0x1a   :  { %628 = dma.done.wait [#allocation6], 256  }
  0x1b   :  { %629 = vsyncadd [#allocation6], 4294967040  ;;  %v69_v0 = vlaneseq  ;;  %v634_v2 = vmov 1966171168   ;;  %vm53_vm1 = vcmask 1042432   ;;  %vm109_vm2 = vcmask 1041408  }
  0x1c   :  { %v372_v3 = vunpack.c.l.s4 %v634_v2  ;;  %v38_v6 = vld [vmem:[#allocation3 + $0x14] ss:$8 sm:$0x3]  ;;  %v39_v7 = vld [vmem:[#allocation3] sm:$0x7] }
  0x1d   :  { %v657_v1 = vshrl.u32 %v69_v0, 7  ;;  %vm659_vm0 = vcmp.lt.s32.totalorder %v69_v0, 256  ;;  %v40_v10 = vld [vmem:[#allocation3 + $0x8] sm:$0x7]  ;;  %v41_v11 = vld [vmem:[#allocation3] sm:$0x38] }
  0x1e   :  { %v373_v9 = vunpack.c.0.s8 %v372_v3  ;;  %v42_v12 = vld [vmem:[#allocation3 + $0x8] sm:$0x38]  ;;  %441 = vst.msk [vmem:[#allocation2 + $0x5] ss:$8 sm:$0x3] %vm659_vm0, %v38_v6  ;;  %v45_v13 = vrot.slane %v41_v11, 3 }
  0x1f   :  { %v71_v5 = vsub.s32 0, %v657_v1  ;;  %v75_v8 = vsub.s32 1, %v657_v1  ;;  %v46_v14 = vrot.slane %v42_v12, 3  ;;  %v82_v15 = vld [vmem:[#allocation3 + $0x15] ss:$8 sm:$0x3] }
  0x20   :  { %v84_v16 = vld [vmem:[#allocation3 + $0x16] ss:$8 sm:$0x3]  ;;  %v88_v17 = vld [vmem:[#allocation3 + $0x17] ss:$8 sm:$0x3]  ;;  %v49_v18 = vsub.f32 %v39_v7, %v45_v13  ;;  %v670_v23 = vsub.s32 %v373_v9, %v657_v1 }
  0x21   :  { %v50_v19 = vsub.f32 %v40_v10, %v46_v14  ;;  %v85_v20 = vsub.f32 %v82_v15, %v84_v16  ;;  %v90_v21 = vld [vmem:[#allocation3 + $0x20] ss:$8 sm:$0x3]  ;;  %v667_v22 = vld [vmem:[#allocation3] sm:$0xc0]  ;;  %v672_v24 = vrot.slane %v38_v6, %v71_v5  ;;  %v674_v25 = vrot.slane %v38_v6, %v75_v8 }
  0x22   :  { %v91_v26 = vmin.f32 %v90_v21, 10.0  ;;  %v676_v27 = vld [vmem:[#allocation3 + $0x8] sm:$0xc0]  ;;  %v678_v28 = vld [vmem:[#allocation3 + $0x10] sm:$0x1]  ;;  %v101_v29 = vmul.f32 %v667_v22, %v667_v22  ;;  %vm494_vm15 = vcmp.eq.s32.totalorder %v657_v1, 0 }
  0x23   :  { %v51_v30 = vand.u32 2147483647, %v49_v18  ;;  %v52_v31 = vand.u32 2147483647, %v50_v19  ;;  %v86_v32 = vmul.f32 %v85_v20, %v85_v20  ;;  %v682_v33 = vld [vmem:[#allocation3 + $0x18] sm:$0x1]  ;;  %v102_v34 = vmul.f32 %v676_v27, %v676_v27 }
  0x24   :  { %v92_v35 = vsub.f32 %v88_v17, %v91_v26  ;;  %v686_v36 = vld [vmem:[#allocation3 + $0x10] sm:$0xe]  ;;  %v688_v37 = vld [vmem:[#allocation3 + $0x18] sm:$0xe]  ;;  %v103_v38 = vmul.f32 %v678_v28, %v678_v28  ;;  %v104_v39 = vmul.f32 %v682_v33, %v682_v33  ;;  %v110_v40 = vrot.slane %v101_v29, 6 }
  0x25   :  { %v54_v41 = vsel %vm53_vm1, %v51_v30, 0.0  ;;  %v61_v42 = vsel %vm53_vm1, %v52_v31, 0.0  ;;  %v113_v43 = vrot.slane %v102_v34, 6  ;;  %v140_v44 = vmul.f32 %v686_v36, %v686_v36  ;;  %v698_v45 = vld [vmem:[#allocation5] sm:$0x7] }
  0x26   :  { %393 = vst.msk [vmem:[#allocation2 + $0x1] ss:$8 sm:$0x3] %vm659_vm0, %v86_v32  ;;  %v55_v46 = vrot.slane %v54_v41, 4  ;;  %v62_v47 = vrot.slane %v61_v42, 4  ;;  %v111_v49 = vrot.slane %v103_v38, 6  ;;  %v141_v51 = vmul.f32 %v688_v37, %v688_v37 }
  0x27   :  { %v93_v48 = vand.u32 2147483647, %v92_v35  ;;  %v114_v50 = vrot.slane %v104_v39, 6  ;;  %v144_v52 = vrot.slane %v140_v44, 1  ;;  %v248_v53 = vmul.f32 %v698_v45, %v698_v45  ;;  %v707_v58 = vld [vmem:[#allocation5 + $0x8] sm:$0x7] }
  0x28   :  { %v56_v54 = vadd.f32 %v55_v46, %v54_v41  ;;  %v63_v55 = vadd.f32 %v62_v47, %v61_v42  ;;  %v112_v57 = vsel %vm109_vm2, %v110_v40, %v111_v49  ;;  %v145_v61 = vrot.slane %v141_v51, 1  ;;  %v720_v40 = vld [vmem:[#allocation5] sm:$0x38]  ;;  %v722_v41 = vld [vmem:[#allocation5 + $0x8] sm:$0x38] }
  0x29   :  { %v94_v56 = vmul.f32 %v93_v48, %v38_v6  ;;  %v115_v59 = vsel %vm109_vm2, %v113_v43, %v114_v50  ;;  %v118_v60 = vsel %vm53_vm1, %v112_v57, 0.0  ;;  %v148_v62 = vsel %vm53_vm1, %v144_v52, 0.0 }
  0x2a   :  { %v57_v63 = vrot.slane %v56_v54, 2  ;;  %v64_v0 = vrot.slane %v63_v55, 2  ;;  %v119_v2 = vrot.slane %v118_v60, 4  ;;  %v125_v3 = vsel %vm53_vm1, %v115_v59, 0.0 }
  0x2b   :  { %396 = vst.msk [vmem:[#allocation2 + $0x2] ss:$8 sm:$0x3] %vm659_vm0, %v94_v56  ;;  %v126_v5 = vrot.slane %v125_v3, 4  ;;  %v149_v6 = vrot.slane %v148_v62, 4  ;;  %v155_v7 = vsel %vm53_vm1, %v145_v61, 0.0  ;;  %v249_v8 = vmul.f32 %v707_v58, %v707_v58 }
  0x2c   :  { %v58_v9 = vadd.f32 %v57_v63, %v56_v54  ;;  %v65_v10 = vadd.f32 %v64_v0, %v63_v55  ;;  %v120_v11 = vadd.f32 %v119_v2, %v118_v60  ;;  %v156_v12 = vrot.slane %v155_v7, 4 }
  0x2d   :  { %v127_v13 = vadd.f32 %v126_v5, %v125_v3  ;;  %v150_v14 = vadd.f32 %v149_v6, %v148_v62  ;;  %v250_v15 = vsel %vm53_vm1, %v248_v53, 0.0  ;;  %v257_v16 = vsel %vm53_vm1, %v249_v8, 0.0 }
  0x2e   :  { %v59_v17 = vrot.slane %v58_v9, 1  ;;  %v66_v18 = vrot.slane %v65_v10, 1  ;;  %v121_v19 = vrot.slane %v120_v11, 2  ;;  %v157_v20 = vadd.f32 %v156_v12, %v155_v7 }
  0x2f   :  { %v128_v21 = vrot.slane %v127_v13, 2  ;;  %v151_v26 = vrot.slane %v150_v14, 2  ;;  %v251_v29 = vrot.slane %v250_v15, 4  ;;  %v258_v30 = vrot.slane %v257_v16, 4 }
  0x30   :  { %v60_v31 = vadd.f32 %v59_v17, %v58_v9  ;;  %v67_v32 = vadd.f32 %v66_v18, %v65_v10  ;;  %v122_v34 = vadd.f32 %v121_v19, %v120_v11  ;;  %v158_v35 = vrot.slane %v157_v20, 2 }
  0x31   :  { %v129_v38 = vadd.f32 %v128_v21, %v127_v13  ;;  %v152_v39 = vadd.f32 %v151_v26, %v150_v14  ;;  %v252_v42 = vadd.f32 %v251_v29, %v250_v15  ;;  %v259_v43 = vadd.f32 %v258_v30, %v257_v16 }
  0x32   :  { %v79_v44 = vmul.f32 %v672_v24, %v60_v31  ;;  %v80_v46 = vmul.f32 %v674_v25, %v67_v32  ;;  %v123_v47 = vrot.slane %v122_v34, 1  ;;  %v159_v48 = vadd.f32 %v158_v35, %v157_v20 }
  0x33   :  { %v130_v49 = vrot.slane %v129_v38, 1  ;;  %v153_v50 = vrot.slane %v152_v39, 1  ;;  %v253_v51 = vrot.slane %v252_v42, 2  ;;  %v260_v52 = vrot.slane %v259_v43, 2 }
  0x34   :  { %v124_v53 = vadd.f32 %v123_v47, %v122_v34  ;;  %v160_v54 = vrot.slane %v159_v48, 1  ;;  %v278_v55 = vmul.f32 %v720_v40, %v720_v40  ;;  %v279_v56 = vmul.f32 %v722_v41, %v722_v41 }
  0x35   :  { %v131_v57 = vadd.f32 %v130_v49, %v129_v38  ;;  %v154_v59 = vadd.f32 %v153_v50, %v152_v39  ;;  %v254_v60 = vadd.f32 %v253_v51, %v252_v42  ;;  %v261_v61 = vadd.f32 %v260_v52, %v259_v43 }
  0x36   :  { %v132_v62 = vmax.f32 %v124_v53, 1e-24  ;;  %v161_v63 = vadd.f32 %v160_v54, %v159_v48  ;;  %v282_v0 = vrot.slane %v278_v55, 3  ;;  %v283_v2 = vrot.slane %v279_v56, 3 }
  0x37   :  { %v133_v3 = vmax.f32 %v131_v57, 1e-24  ;;  %v162_v5 = vmax.f32 %v154_v59, 1e-24  ;;  %v255_v6 = vrot.slane %v254_v60, 1  ;;  %v262_v7 = vrot.slane %v261_v61, 1 }
  0x38   :  { %556 = vrsqrt.f32 %v132_v62  ;;  %v163_v8 = vmax.f32 %v161_v63, 1e-24  ;;  %v286_v9 = vsel %vm53_vm1, %v282_v0, 0.0  ;;  %v293_v10 = vsel %vm53_vm1, %v283_v2, 0.0 }
  0x39   :  { %558 = vrsqrt.f32 %v133_v3  ;;  %v732_v11 = vadd.f32 %v255_v6, %v254_v60  ;;  %v734_v12 = vadd.f32 %v262_v7, %v261_v61  ;;  %v287_v13 = vrot.slane %v286_v9, 4 }
  0x3a   :  { %560 = vrsqrt.f32 %v162_v5  ;;  %v294_v14 = vrot.slane %v293_v10, 4  ;;  %v370_v15 = vcombine.low %v79_v44, %v80_v46 }
  0x3b   :  { %562 = vrsqrt.f32 %v163_v8  ;;  %v288_v16 = vadd.f32 %v287_v13, %v286_v9  ;;  %vm266_vm3 = vcmp.eq.f32.partialorder %v732_v11, inf  ;;  %vm268_vm4 = vcmp.eq.f32.partialorder %v732_v11, 0.0 }
  0x3c   :  { %564 = vrsqrt.f32 %v732_v11  ;;  %v295_v17 = vadd.f32 %v294_v14, %v293_v10  ;;  %v377_v18 = vrot.slane %v370_v15, %v670_v23  ;;  %v269_v42 = vand.u32 2147483648, %v732_v11 }
  0x3d   :  { %566 = vrsqrt.f32 %v734_v12  ;;  %v289_v19 = vrot.slane %v288_v16, 2  ;;  %vm273_vm5 = vcmp.eq.f32.partialorder %v734_v12, inf  ;;  %vm275_vm6 = vcmp.eq.f32.partialorder %v734_v12, 0.0 }
  0x3e   :  { %v296_v20 = vrot.slane %v295_v17, 2  ;;  %v384_v21 = vrot.slane %v377_v18, %v670_v23 }
  0x3f   :  { %v290_v26 = vadd.f32 %v289_v19, %v288_v16 }
  0x40   :  { %v297_v29 = vadd.f32 %v296_v20, %v295_v17  ;;  %390 = vst.msk [vmem:[#allocation2] ss:$8 sm:$0x3] %vm659_vm0, %v384_v21 }
  0x41   :  { %v291_v30 = vrot.slane %v290_v26, 1 }
  0x42   :  { %v298_v31 = vrot.slane %v297_v29, 1 }
  0x43   :  { %v742_v34 = vadd.f32 %v291_v30, %v290_v26 }
  0x44   :  { %v744_v35 = vadd.f32 %v298_v31, %v297_v29 }
  0x45   :  { %v557_v32 = vpop.eup %556  ;;  %568 = vrsqrt.f32 %v742_v34  ;;  %vm302_vm7 = vcmp.eq.f32.partialorder %v742_v34, inf  ;;  %vm304_vm8 = vcmp.eq.f32.partialorder %v742_v34, 0.0 }
  0x46   :  { %v559_v38 = vpop.eup %558  ;;  %v136_v44 = vmul.f32 %v557_v32, %v667_v22  ;;  %v138_v46 = vmul.f32 %v557_v32, %v678_v28  ;;  %570 = vrsqrt.f32 %v744_v35  ;;  %v276_v22 = vand.u32 2147483648, %v734_v12 }
  0x47   :  { %v561_v39 = vpop.eup %560  ;;  %v137_v49 = vmul.f32 %v559_v38, %v676_v27  ;;  %v139_v50 = vmul.f32 %v559_v38, %v682_v33  ;;  %v305_v28 = vand.u32 2147483648, %v742_v34  ;;  %v312_v27 = vand.u32 2147483648, %v744_v35 }
  0x48   :  { %v563_v43 = vpop.eup %562  ;;  %v166_v47 = vmul.f32 %v561_v39, %v686_v36  ;;  %vm309_vm9 = vcmp.eq.f32.partialorder %v744_v35, inf  ;;  %vm311_vm10 = vcmp.eq.f32.partialorder %v744_v35, 0.0 }
  0x49   :  { %v565_v48 = vpop.eup %564  ;;  %v167_v51 = vmul.f32 %v563_v43, %v688_v37 }
  0x4a   :  { %v567_v52 = vpop.eup %566  ;;  %v170_v53 = vrot.slane %v166_v47, 3  ;;  %v265_v54 = vmul.f32 %v565_v48, %v732_v11 }
  0x4b   :  { %v171_v36 = vrot.slane %v167_v51, 3  ;;  %v272_v55 = vmul.f32 %v567_v52, %v734_v12 }
  0x4c   :  { %v174_v33 = vsub.f32 %v136_v44, %v170_v53  ;;  %v176_v56 = vsub.f32 %v138_v46, %v170_v53  ;;  %v210_v37 = vmul.f32 %v170_v53, %v136_v44  ;;  %v212_v57 = vmul.f32 %v170_v53, %v138_v46 }
  0x4d   :  { %v175_v59 = vsub.f32 %v137_v49, %v171_v36  ;;  %v177_v60 = vsub.f32 %v139_v50, %v171_v36  ;;  %v211_v61 = vmul.f32 %v171_v36, %v137_v49  ;;  %v213_v62 = vmul.f32 %v171_v36, %v139_v50 }
  0x4e   :  { %v178_v63 = vand.u32 2147483647, %v174_v33  ;;  %v180_v0 = vand.u32 2147483647, %v176_v56  ;;  %v218_v2 = vrot.slane %v210_v37, 6  ;;  %v219_v3 = vrot.slane %v212_v57, 6 }
  0x4f   :  { %v179_v5 = vand.u32 2147483647, %v175_v59  ;;  %v181_v6 = vand.u32 2147483647, %v177_v60  ;;  %v221_v7 = vrot.slane %v211_v61, 6  ;;  %v222_v8 = vrot.slane %v213_v62, 6 }
  0x50   :  { %v186_v9 = vrot.slane %v178_v63, 6  ;;  %v187_v10 = vrot.slane %v180_v0, 6  ;;  %v220_v13 = vsel %vm109_vm2, %v218_v2, %v219_v3  ;;  %v267_v14 = vsel %vm266_vm3, %v732_v11, %v265_v54 }
  0x51   :  { %v189_v15 = vrot.slane %v179_v5, 6  ;;  %v190_v16 = vrot.slane %v181_v6, 6  ;;  %v223_v17 = vsel %vm109_vm2, %v221_v7, %v222_v8  ;;  %v226_v18 = vsel %vm53_vm1, %v220_v13, 0.0 }
  0x52   :  { %v188_v19 = vsel %vm109_vm2, %v186_v9, %v187_v10  ;;  %v227_v20 = vrot.slane %v226_v18, 4  ;;  %v233_v21 = vsel %vm53_vm1, %v223_v17, 0.0  ;;  %v270_v26 = vsel %vm268_vm4, %v269_v42, %v267_v14  ;;  %v569_v38 = vpop.eup %568 }
  0x53   :  { %v191_v29 = vsel %vm109_vm2, %v189_v15, %v190_v16  ;;  %v194_v30 = vsel %vm53_vm1, %v188_v19, 0.0  ;;  %v234_v31 = vrot.slane %v233_v21, 4  ;;  %v274_v32 = vsel %vm273_vm5, %v734_v12, %v272_v55  ;;  %v571_v47 = vpop.eup %570 }
  0x54   :  { %v195_v39 = vrot.slane %v194_v30, 4  ;;  %v201_v43 = vsel %vm53_vm1, %v191_v29, 0.0  ;;  %v228_v44 = vadd.f32 %v227_v20, %v226_v18  ;;  %v277_v46 = vsel %vm275_vm6, %v276_v22, %v274_v32 }
  0x55   :  { %v202_v11 = vrot.slane %v201_v43, 4  ;;  %v235_v42 = vadd.f32 %v234_v31, %v233_v21  ;;  %v301_v48 = vmul.f32 %v569_v38, %v742_v34  ;;  %v548_v49 = vadd.f32 -1.0, %v270_v26 }
  0x56   :  { %v196_v50 = vadd.f32 %v195_v39, %v194_v30  ;;  %v229_v51 = vrot.slane %v228_v44, 2  ;;  %v308_v52 = vmul.f32 %v571_v47, %v744_v35  ;;  %v549_v53 = vadd.f32 -1.0, %v277_v46 }
  0x57   :  { %v203_v36 = vadd.f32 %v202_v11, %v201_v43  ;;  %v236_v54 = vrot.slane %v235_v42, 2  ;;  %v303_v55 = vsel %vm302_vm7, %v742_v34, %v301_v48  ;;  %v316_v33 = vmul.f32 %v548_v49, %v548_v49 }
  0x58   :  { %v197_v12 = vrot.slane %v196_v50, 2  ;;  %v230_v22 = vadd.f32 %v229_v51, %v228_v44  ;;  %v306_v56 = vsel %vm304_vm8, %v305_v28, %v303_v55  ;;  %v310_v37 = vsel %vm309_vm9, %v744_v35, %v308_v52 }
  0x59   :  { %v204_v57 = vrot.slane %v203_v36, 2  ;;  %v237_v59 = vadd.f32 %v236_v54, %v235_v42  ;;  %v313_v60 = vsel %vm311_vm10, %v312_v27, %v310_v37  ;;  %v317_v61 = vmul.f32 %v549_v53, %v549_v53 }
  0x5a   :  { %v198_v62 = vadd.f32 %v197_v12, %v196_v50  ;;  %v231_v63 = vrot.slane %v230_v22, 1  ;;  %v318_v0 = vadd.f32 1e-05, %v270_v26  ;;  %v319_v2 = vadd.f32 1e-05, %v277_v46 }
  0x5b   :  { %v205_v3 = vadd.f32 %v204_v57, %v203_v36  ;;  %v238_v5 = vrot.slane %v237_v59, 1  ;;  %v324_v6 = vadd.f32 1e-05, %v306_v56  ;;  %v325_v7 = vadd.f32 1e-05, %v313_v60 }
  0x5c   :  { %v199_v34 = vrot.slane %v198_v62, 1  ;;  %v232_v28 = vadd.f32 %v231_v63, %v230_v22  ;;  %572 = vrcp.f32 %v318_v0  ;;  %v445_v8 = vcombine.low %v316_v33, %v317_v61 }
  0x5d   :  { %v206_v9 = vrot.slane %v205_v3, 1  ;;  %v239_v10 = vadd.f32 %v238_v5, %v237_v59  ;;  %574 = vrcp.f32 %v319_v2  ;;  %vm495_vm2 = vcmp.eq.s32.totalorder %v657_v1, 2 }
  0x5e   :  { %v200_v13 = vadd.f32 %v199_v34, %v198_v62  ;;  %v240_v14 = vsub.f32 1.0, %v232_v28  ;;  %576 = vrcp.f32 %v324_v6  ;;  %v452_v35 = vrot.slane %v445_v8, %v670_v23  ;;  %vm496_vm3 = vmor %vm494_vm15, %vm495_vm2 }
  0x5f   :  { %v207_v27 = vadd.f32 %v206_v9, %v205_v3  ;;  %v241_v15 = vsub.f32 1.0, %v239_v10  ;;  %578 = vrcp.f32 %v325_v7  ;;  %v635_v10 = vmov 0.0  }
  0x60   :  { %v208_v16 = vmul.f32 %v200_v13, %v672_v24  ;;  %v242_v17 = vmul.f32 %v240_v14, %v672_v24  ;;  %v459_v18 = vrot.slane %v452_v35, %v670_v23  ;;  %v514_v13 = vsel %vm494_vm15, 1.0, %v635_v10 }
  0x61   :  { %v209_v19 = vmul.f32 %v207_v27, %v674_v25  ;;  %v243_v20 = vmul.f32 %v241_v15, %v674_v25  ;;  %v517_v27 = vsel %vm495_vm2, 0.1, %v635_v10  ;;  %vm499_vm4 = vcmp.eq.s32.totalorder %v657_v1, 4 }
  0x62   :  { %462 = vst.msk [vmem:[#allocation2 + $0x6] ss:$8 sm:$0x3] %vm659_vm0, %v459_v18  ;;  %vm504_vm6 = vcmp.ge.s32.totalorder %v657_v1, 6  ;;  %vm523_vm7 = vcmp.eq.s32.totalorder %v657_v1, 6  ;;  %v509_v18 = vsub.s32 5, %v657_v1 }
  0x63   :  { %v400_v21 = vcombine.low %v208_v16, %v209_v19  ;;  %v421_v26 = vcombine.low %v242_v17, %v243_v20  ;;  %v521_v17 = vsel %vm499_vm4, 0.05, %v635_v10  ;;  %vm526_vm9 = vcmp.eq.s32.totalorder %v657_v1, 7 }
  0x64   :  { %vm536_vm10 = vcmp.eq.s32.totalorder %v657_v1, 5 }
  0x65   :  { %v407_v29 = vrot.slane %v400_v21, %v670_v23  ;;  %v428_v30 = vrot.slane %v421_v26, %v670_v23  ;;  %v505_v21 = vsel %vm504_vm6, 0.00390625, %v635_v10  ;;  %v524_v26 = vsel %vm523_vm7, 0.1, %v635_v10 }
  0x67   :  { %v414_v31 = vrot.slane %v407_v29, %v670_v23  ;;  %v435_v32 = vrot.slane %v428_v30, %v670_v23 }
  0x69   :  { %v573_v24 = vpop.eup %572  ;;  %417 = vst.msk [vmem:[#allocation2 + $0x3] ss:$8 sm:$0x3] %vm659_vm0, %v414_v31  ;;  %438 = vst.msk [vmem:[#allocation2 + $0x4] ss:$8 sm:$0x3] %vm659_vm0, %v435_v32 }
  0x6a   :  { %v575_v25 = vpop.eup %574  ;;  %v321_v43 = vmul.f32 %v573_v24, %v698_v45 }
  0x6b   :  { %v577_v38 = vpop.eup %576  ;;  %v323_v46 = vmul.f32 %v575_v25, %v707_v58  ;;  %v527_v25 = vsel %vm526_vm9, 0.005, %v635_v10 }
  0x6c   :  { %v579_v39 = vpop.eup %578  ;;  %v327_v44 = vmul.f32 %v577_v38, %v720_v40 }
  0x6d   :  { %v329_v47 = vmul.f32 %v579_v39, %v722_v41 }
  0x6e   :  { %v332_v11 = vrot.slane %v327_v44, 3 }
  0x6f   :  { %v333_v42 = vrot.slane %v329_v47, 3 }
  0x70   :  { %v336_v48 = vsub.f32 %v321_v43, %v332_v11 }
  0x71   :  { %v337_v49 = vsub.f32 %v323_v46, %v333_v42 }
  0x72   :  { %v338_v50 = vmul.f32 %v336_v48, %v336_v48 }
  0x73   :  { %v339_v51 = vmul.f32 %v337_v49, %v337_v49 }
  0x74   :  { %v340_v52 = vsel %vm53_vm1, %v338_v50, 0.0  ;;  %v537_v50 = vsel %vm536_vm10, 1.0, %v635_v10 }
  0x75   :  { %v341_v53 = vrot.slane %v340_v52, 4  ;;  %v347_v36 = vsel %vm53_vm1, %v339_v51, 0.0  ;;  %vm502_vm1 = vcmp.eq.s32.totalorder %v657_v1, 1 }
  0x76   :  { %v348_v54 = vrot.slane %v347_v36, 4  ;;  %v515_v14 = vsel %vm502_vm1, 0.1, %v635_v10  ;;  %v503_v20 = vsel %vm502_vm1, 0.00390625, %v635_v10 }
  0x77   :  { %v342_v55 = vadd.f32 %v341_v53, %v340_v52  ;;  %v516_v35 = vadd.f32 %v515_v14, %v514_v13  ;;  %v506_v31 = vadd.f32 %v505_v21, %v503_v20 }
  0x78   :  { %v349_v45 = vadd.f32 %v348_v54, %v347_v36 }
  0x79   :  { %v343_v33 = vrot.slane %v342_v55, 2  ;;  %v518_v4 = vadd.f32 %v517_v27, %v516_v35 }
  0x7a   :  { %v350_v40 = vrot.slane %v349_v45, 2 }
  0x7b   :  { %v344_v12 = vadd.f32 %v343_v33, %v342_v55 }
  0x7c   :  { %v351_v58 = vadd.f32 %v350_v40, %v349_v45 }
  0x7d   :  { %v345_v22 = vrot.slane %v344_v12, 1 }
  0x7e   :  { %v352_v41 = vrot.slane %v351_v58, 1 }
  0x7f   :  { %v346_v56 = vadd.f32 %v345_v22, %v344_v12 }
  0x80   :  { %v353_v37 = vadd.f32 %v352_v41, %v351_v58 }
  0x81   :  { %580 = vrsqrt.f32 %v346_v56  ;;  %vm356_vm11 = vcmp.eq.f32.partialorder %v346_v56, inf  ;;  %v359_v59 = vand.u32 2147483648, %v346_v56  ;;  %vm358_vm12 = vcmp.eq.f32.partialorder %v346_v56, 0.0 }
  0x82   :  { %582 = vrsqrt.f32 %v353_v37  ;;  %vm363_vm13 = vcmp.eq.f32.partialorder %v353_v37, inf  ;;  %v366_v62 = vand.u32 2147483648, %v353_v37  ;;  %vm365_vm14 = vcmp.eq.f32.partialorder %v353_v37, 0.0 }
  0x8e   :  { %v581_v57 = vpop.eup %580 }
  0x8f   :  { %v583_v60 = vpop.eup %582  ;;  %v355_v61 = vmul.f32 %v581_v57, %v346_v56 }
  0x90   :  { %v362_v63 = vmul.f32 %v583_v60, %v353_v37 }
  0x91   :  { %v357_v0 = vsel %vm356_vm11, %v346_v56, %v355_v61  ;;  %vm540_vm11 = vcmask 7168  }
  0x92   :  { %v360_v2 = vsel %vm358_vm12, %v359_v59, %v357_v0  ;;  %v364_v3 = vsel %vm363_vm13, %v353_v37, %v362_v63 }
  0x93   :  { %v367_v5 = vsel %vm365_vm14, %v366_v62, %v364_v3 }
  0x94   :  { %v466_v6 = vcombine.low %v360_v2, %v367_v5 }
  0x96   :  { %v473_v7 = vrot.slane %v466_v6, %v670_v23 }
  0x98   :  { %v480_v34 = vrot.slane %v473_v7, %v670_v23 }
  0x9a   :  { %483 = vst.msk [vmem:[#allocation2 + $0x7] ss:$8 sm:$0x3] %vm659_vm0, %v480_v34  ;;  %vm497_vm0 = vcmp.eq.s32.totalorder %v657_v1, 3 }
  0x9b   :  { %v519_v15 = vsel %vm497_vm0, 0.05, %v635_v10  ;;  %vm498_vm5 = vmor %vm496_vm3, %vm497_vm0 }
  0x9c   :  { %v520_v16 = vadd.f32 %v519_v15, %v518_v4  ;;  %vm500_vm8 = vmor %vm498_vm5, %vm499_vm4 }
  0x9d   :  { %v501_v30 = vsel %vm500_vm8, 1.0, %v635_v10 }
  0x9e   :  { %v522_v19 = vadd.f32 %v521_v17, %v520_v16 }
  0xa0   :  { %v525_v24 = vadd.f32 %v524_v26, %v522_v19 }
  0xa1   :  { %v485_v28 = vld [vmem:[#allocation2] sm:$0xff]  ;;  %v486_v8 = vld [vmem:[#allocation2 + $0x8] sm:$0xff] }
  0xa2   :  { %v487_v9 = vadd.f32 %v486_v8, %v485_v28  ;;  %v528_v43 = vadd.f32 %v527_v25, %v525_v24 }
  0xa4   :  { %488 = vadd.xlane.f32.xlu0 %v487_v9 }
 0x12d   :  { %v489_v23 = vpop.xlane.xlu0 %488 }
 0x12e   :  { %584 = vrcp.f32 %v489_v23 }
 0x13b   :  { %v585_v29 = vpop.eup %584 }
 0x13c   :  { %v510_v32 = vrot.slane %v585_v29, %v509_v18 }
 0x13e   :  { %v511_v38 = vmul.f32 %v510_v32, %v501_v30 }
 0x140   :  { %v512_v39 = vadd.f32 %v511_v38, %v506_v31 }
 0x142   :  { %v513_v44 = vmul.f32 %v512_v39, %v489_v23 }
 0x144   :  { %v529_v46 = vmul.f32 %v528_v43, %v513_v44 }
 0x146   :  { %v530_v47 = vrot.slane %v529_v46, 4 }
 0x148   :  { %v531_v11 = vadd.f32 %v530_v47, %v529_v46 }
 0x14a   :  { %v532_v42 = vrot.slane %v531_v11, 2 }
 0x14c   :  { %v533_v48 = vadd.f32 %v532_v42, %v531_v11 }
 0x14e   :  { %v534_v49 = vrot.slane %v533_v48, 1 }
 0x150   :  { %v535_v51 = vadd.f32 %v534_v49, %v533_v48 }
 0x152   :  { %v538_v52 = vmul.f32 %v537_v50, %v535_v51 }
 0x154   :  { %v539_v53 = vadd.f32 %v538_v52, %v513_v44 }
 0x156   :  { %541 = vst.msk [vmem:[%s843_s2] sm:$0xff] %vm540_vm11, %v539_v53 }
 0x157   :  { %546 = vsyncpa [#allocation4], 1 }
 0x158   :  { %547 = vsyncpa [#allocation6], 1 }

</bundles_post_ra>
